<compile_context>
chip_gen: v6e
topology: v6e:2x2x1
jax: 0.10.0
libtpu: 0.0.40
codegen_flags: <defaults>
</compile_context>

<pallas_src>
import functools

import jax
import jax.numpy as jnp
from jax import lax
from jax.experimental import pallas as pl
from jax.experimental.pallas import tpu as pltpu


# --------------------------------------------------------------------------
# Fused kernel: batched nearest-neighbor gather (online argmin over Ng tiles)
# + top_net epilogue on the last Ng tile.
# --------------------------------------------------------------------------
def fused_masif_kernel(s_aug_ref, s_b_ref, g_aug_ref, g_b_ref, g_feat_ref,
                       w1_ref, b1_ref, w2_ref, b2_ref,
                       out_ref, min_d_ref, best_ref):
    j = pl.program_id(1)

    @pl.when(j == 0)
    def _init():
        min_d_ref[...] = jnp.full_like(min_d_ref, jnp.inf)
        best_ref[...] = jnp.zeros_like(best_ref)

    # Squared-distance proxy straight off the MXU (row-constant ||s||^2 is
    # dropped; argmin is unchanged):
    #   d2[i, j] = ||g_j||^2 - 2 * <s_i, g_j>
    d2 = jnp.dot(s_aug_ref[...], g_aug_ref[...],
                 preferred_element_type=jnp.float32)               # [TNS, TNG]

    # Only compare against graph nodes of the same protein (batch id); padded
    # surface rows use id -1 and padded graph columns -2, so they never match.
    same = s_b_ref[...] == g_b_ref[...]                            # [TNS, TNG]
    dist = jnp.where(same, d2, jnp.inf)

    tns, tng = dist.shape
    tile_min = jnp.min(dist, axis=1, keepdims=True)                # [TNS, 1]

    # First-index argmin within this tile (torch.argmin tie-break) as one-hot.
    # `col` is a [1, TNG] lane iota; both compares broadcast it, so no full
    # [TNS, TNG] int32 temporary is materialized.
    col = lax.broadcasted_iota(jnp.int32, (1, tng), 1)             # [1, TNG]
    idx = jnp.min(jnp.where(dist <= tile_min, col, tng),
                  axis=1, keepdims=True)                           # [TNS, 1]
    one_hot = (col == idx).astype(jnp.float32)                     # [TNS, TNG]
    cand = jnp.dot(one_hot, g_feat_ref[...],
                   preferred_element_type=jnp.float32)             # [TNS, D]

    # Online update: strict '<' so earlier Ng tiles win ties (first-occurrence
    # semantics).  Fully-masked tiles give tile_min = +inf and never replace,
    # so rows whose protein has no graph nodes stay at the zero init.
    take = tile_min < min_d_ref[...]                               # [TNS, 1]
    min_d_ref[...] = jnp.where(take, tile_min, min_d_ref[...])
    best_ref[...] = jnp.where(take, cand, best_ref[...])

    # top_net epilogue, applied while the gathered tile is still in VMEM.
    @pl.when(j == pl.num_programs(1) - 1)
    def _epilogue():
        x = best_ref[...]                                          # [TNS, D]
        # Linear(D, D) with eval-mode BatchNorm folded in (wrapper-side).
        # Dropout(p=0.1) is identity in eval mode.
        h = jnp.dot(x, w1_ref[...],
                    preferred_element_type=jnp.float32) + b1_ref[...]
        h = h * jax.nn.sigmoid(h)                                  # SiLU
        y = jnp.dot(h, w2_ref[...],
                    preferred_element_type=jnp.float32) + b2_ref[...]
        out_ref[...] = jax.nn.sigmoid(y)


def _round_up(x, m):
    return (x + m - 1) // m * m


# --------------------------------------------------------------------------
# Wrapper: augmented-operand construction, padding, BN folding, grid setup.
# --------------------------------------------------------------------------
def masif_site_forward(batch, params, *, tns=512, tng=2048):
    graph_x = batch["graph_x"].astype(jnp.float32)
    graph_pos = batch["graph_pos"].astype(jnp.float32)
    surface_pos = batch["surface_verts"].astype(jnp.float32)
    s_batch = batch["surface_batch"].astype(jnp.int32)
    g_batch = batch["graph_batch"].astype(jnp.int32)

    ns = surface_pos.shape[0]
    ng, d = graph_x.shape
    out_dims = params["w2"].shape[1]

    ns_pad = _round_up(ns, tns)
    ng_pad = _round_up(ng, tng)

    # Augmented surface operand [x, y, z, 1, 0, 0, 0, 0]  -> [Ns_pad, 8]
    s_aug = jnp.concatenate(
        [surface_pos, jnp.ones((ns, 1), jnp.float32),
         jnp.zeros((ns, 4), jnp.float32)], axis=1)
    s_aug = jnp.pad(s_aug, ((0, ns_pad - ns), (0, 0)))

    # Augmented graph operand rows [-2gx, -2gy, -2gz, ||g||^2, 0,0,0,0]
    # transposed to [8, Ng_pad] so d2 = s_aug @ g_aug.
    g_sq = jnp.sum(graph_pos * graph_pos, axis=1, keepdims=True)   # [Ng, 1]
    g_aug = jnp.concatenate(
        [-2.0 * graph_pos, g_sq, jnp.zeros((ng, 4), jnp.float32)], axis=1)
    g_aug = jnp.pad(g_aug, ((0, ng_pad - ng), (0, 0))).T           # [8, Ng_pad]

    g_feat_p = jnp.pad(graph_x, ((0, ng_pad - ng), (0, 0)))

    # Padded surface rows get batch id -1, padded graph nodes -2, so they
    # never match anything and the padded rows/columns are inert.
    s_b_p = jnp.pad(s_batch, (0, ns_pad - ns),
                    constant_values=-1).reshape(ns_pad, 1)
    g_b_p = jnp.pad(g_batch, (0, ng_pad - ng),
                    constant_values=-2).reshape(1, ng_pad)

    # Fold eval-mode BatchNorm1d into the first Linear (one-time, outside the
    # kernel): h_bn = (x@W1 + b1 - mean) * gamma/sqrt(var+eps) + beta.
    eps = jnp.float32(1e-5)
    scale = params["gamma"] * lax.rsqrt(params["var"] + eps)       # [1, D]
    w1f = params["w1"] * scale                                     # [D, D]
    b1f = (params["b1"] - params["mean"]) * scale + params["beta"]

    grid = (ns_pad // tns, ng_pad // tng)

    out = pl.pallas_call(
        fused_masif_kernel,
        out_shape=jax.ShapeDtypeStruct((ns_pad, out_dims), jnp.float32),
        grid_spec=pltpu.PrefetchScalarGridSpec(
            num_scalar_prefetch=0,
            grid=grid,
            in_specs=[
                pl.BlockSpec((tns, 8), lambda i, j: (i, 0)),        # s_aug
                pl.BlockSpec((tns, 1), lambda i, j: (i, 0)),        # s_batch
                pl.BlockSpec((8, tng), lambda i, j: (0, j)),        # g_aug
                pl.BlockSpec((1, tng), lambda i, j: (0, j)),        # g_batch
                pl.BlockSpec((tng, d), lambda i, j: (j, 0)),        # g_feat
                pl.BlockSpec((d, d), lambda i, j: (0, 0)),          # W1 (BN-folded)
                pl.BlockSpec((1, d), lambda i, j: (0, 0)),          # b1 (BN-folded)
                pl.BlockSpec((d, out_dims), lambda i, j: (0, 0)),   # W2
                pl.BlockSpec((1, out_dims), lambda i, j: (0, 0)),   # b2
            ],
            out_specs=pl.BlockSpec((tns, out_dims), lambda i, j: (i, 0)),
            scratch_shapes=[
                pltpu.VMEM((tns, 1), jnp.float32),   # running min distance
                pltpu.VMEM((tns, d), jnp.float32),   # running best feature row
            ],
        ),
        compiler_params=pltpu.CompilerParams(
            dimension_semantics=("parallel", "arbitrary"),
        ),
    )(s_aug, s_b_p, g_aug, g_b_p, g_feat_p,
      w1f, b1f, params["w2"], params["b2"])

    return out[:ns]


# --------------------------------------------------------------------------
# Parameters (weights stored [in, out] so the kernel computes x @ W).
# --------------------------------------------------------------------------
def init_params(key, encoded_dims, output_dims):
    k1, k2, k3, k4 = jax.random.split(key, 4)
    return {
        "w1": (jax.random.normal(k1, (encoded_dims, encoded_dims), jnp.float32)
               * 0.1),
        "b1": jax.random.normal(k2, (1, encoded_dims), jnp.float32) * 0.01,
        "gamma": jnp.ones((1, encoded_dims), jnp.float32),
        "beta": jnp.zeros((1, encoded_dims), jnp.float32),
        "mean": jnp.zeros((1, encoded_dims), jnp.float32),
        "var": jnp.ones((1, encoded_dims), jnp.float32),
        "w2": (jax.random.normal(k3, (encoded_dims, output_dims), jnp.float32)
               * 0.1),
        "b2": jax.random.normal(k4, (1, output_dims), jnp.float32) * 0.01,
    }


# --------------------------------------------------------------------------
# Pure-JAX reference of the original module (eval mode), for validation.
# --------------------------------------------------------------------------
def reference_forward(batch, params):
    gx = batch["graph_x"]
    gp = batch["graph_pos"]
    sp = batch["surface_verts"]
    sb = batch["surface_batch"]
    gb = batch["graph_batch"]

    d2 = jnp.sum((sp[:, None, :] - gp[None, :, :]) ** 2, axis=-1)
    same = sb[:, None] == gb[None, :]
    dist = jnp.where(same, d2, jnp.inf)
    idx = jnp.argmin(dist, axis=1)
    mapped = gx[idx]
    has_any = jnp.any(same, axis=1, keepdims=True)
    mapped = jnp.where(has_any, mapped, 0.0)

    eps = 1e-5
    h = mapped @ params["w1"] + params["b1"]
    h = ((h - params["mean"]) * lax.rsqrt(params["var"] + eps)
         * params["gamma"] + params["beta"])
    h = h * jax.nn.sigmoid(h)
    y = h @ params["w2"] + params["b2"]
    return jax.nn.sigmoid(y)


if __name__ == "__main__":
    key = jax.random.PRNGKey(0)
    k_gx, k_gp, k_sp, k_params = jax.random.split(key, 4)

    ENCODED_DIMS = 32   # cfg_head.encoded_dims
    OUTPUT_DIMS = 1     # cfg_head.output_dims
    NS_PER = (96, 96)   # surface vertices per protein (2 proteins)
    NG_PER = (136, 136) # graph nodes per protein
    NS = sum(NS_PER)
    NG = sum(NG_PER)

    batch = {
        "graph_x": jax.random.normal(k_gx, (NG, ENCODED_DIMS), jnp.float32),
        "graph_pos": jax.random.normal(k_gp, (NG, 3), jnp.float32) * 5.0,
        "surface_verts": jax.random.normal(k_sp, (NS, 3), jnp.float32) * 5.0,
        "surface_batch": jnp.concatenate(
            [jnp.full((n,), b, jnp.int32) for b, n in enumerate(NS_PER)]),
        "graph_batch": jnp.concatenate(
            [jnp.full((n,), b, jnp.int32) for b, n in enumerate(NG_PER)]),
    }
    params = init_params(k_params, ENCODED_DIMS, OUTPUT_DIMS)

    # Small tiles so the demo exercises a real multi-step (3 x 3) grid with
    # the online argmin carry; production defaults are tns=512, tng=2048
    # (graph side becomes fully VMEM-resident whenever Ng_pad <= tng).
    run = functools.partial(masif_site_forward, tns=64, tng=128)
    out = jax.block_until_ready(run(batch, params))

    assert out.shape == (NS, OUTPUT_DIMS)
    assert bool(jnp.all(jnp.isfinite(out)))
    ref = reference_forward(batch, params)
    assert bool(jnp.allclose(out, ref, atol=1e-3, rtol=1e-3)), (
        float(jnp.max(jnp.abs(out - ref))))
    print("KERNEL_OK")
</pallas_src>

<mosaic_0001>
module attributes {stable_mosaic.version = 11 : i64} {
  func.func @fused_masif_kernel(%arg0: i32, %arg1: i32, %arg2: memref<64x8xf32, #tpu.memory_space<vmem>>, %arg3: memref<64x1xi32, #tpu.memory_space<vmem>>, %arg4: memref<8x128xf32, #tpu.memory_space<vmem>>, %arg5: memref<1x128xi32, #tpu.memory_space<vmem>>, %arg6: memref<128x32xf32, #tpu.memory_space<vmem>>, %arg7: memref<32x32xf32, #tpu.memory_space<vmem>>, %arg8: memref<1x32xf32, #tpu.memory_space<vmem>>, %arg9: memref<32x1xf32, #tpu.memory_space<vmem>>, %arg10: memref<1x1xf32, #tpu.memory_space<vmem>>, %arg11: memref<64x1xf32, #tpu.memory_space<vmem>>, %arg12: memref<64x1xf32, #tpu.memory_space<vmem>>, %arg13: memref<64x32xf32, #tpu.memory_space<vmem>>) attributes {dimension_semantics = [#tpu.dimension_semantics<parallel>, #tpu.dimension_semantics<arbitrary>], iteration_bounds = array<i64: 3, 3>, scalar_prefetch = 0 : i64, scratch_operands = 2 : i64, tpu.core_type = #tpu.core_type<tc>, window_params = [{transform_indices = @transform_0, window_bounds = array<i64: 64, 8>}, {transform_indices = @transform_1, window_bounds = array<i64: 64, 1>}, {transform_indices = @transform_2, window_bounds = array<i64: 8, 128>}, {transform_indices = @transform_3, window_bounds = array<i64: 1, 128>}, {transform_indices = @transform_4, window_bounds = array<i64: 128, 32>}, {pipeline_mode = #tpu.pipeline_mode<synchronous>, transform_indices = @transform_5, window_bounds = array<i64: 32, 32>}, {pipeline_mode = #tpu.pipeline_mode<synchronous>, transform_indices = @transform_6, window_bounds = array<i64: 1, 32>}, {pipeline_mode = #tpu.pipeline_mode<synchronous>, transform_indices = @transform_7, window_bounds = array<i64: 32, 1>}, {pipeline_mode = #tpu.pipeline_mode<synchronous>, transform_indices = @transform_8, window_bounds = array<i64: 1, 1>}, {transform_indices = @transform_9, window_bounds = array<i64: 64, 1>}]} {
    %c0_i32 = arith.constant 0 : i32
    %0 = arith.cmpi eq, %arg1, %c0_i32 : i32
    %1 = arith.extui %0 : i1 to i32
    %c0_i32_0 = arith.constant 0 : i32
    %2 = arith.cmpi ne, %1, %c0_i32_0 : i32
    scf.if %2 {
      %cst_25 = arith.constant 0x7F800000 : f32
      %44 = vector.broadcast %cst_25 : f32 to vector<64x1xf32>
      %c0_26 = arith.constant 0 : index
      %c0_27 = arith.constant 0 : index
      %45 = vector.load %arg12[%c0_26, %c0_27] : memref<64x1xf32, #tpu.memory_space<vmem>>, vector<64x1xf32>
      tpu.vector_store %arg12[%c0_26, %c0_27], %44 {strides = array<i32>} : memref<64x1xf32, #tpu.memory_space<vmem>>, vector<64x1xf32>,
      %cst_28 = arith.constant 0.000000e+00 : f32
      %46 = vector.broadcast %cst_28 : f32 to vector<64x32xf32>
      %c0_29 = arith.constant 0 : index
      %c0_30 = arith.constant 0 : index
      %47 = vector.load %arg13[%c0_29, %c0_30] : memref<64x32xf32, #tpu.memory_space<vmem>>, vector<64x32xf32>
      tpu.vector_store %arg13[%c0_29, %c0_30], %46 {strides = array<i32>} : memref<64x32xf32, #tpu.memory_space<vmem>>, vector<64x32xf32>,
    } else {
    }
    %c0 = arith.constant 0 : index
    %c0_1 = arith.constant 0 : index
    %3 = vector.load %arg2[%c0, %c0_1] : memref<64x8xf32, #tpu.memory_space<vmem>>, vector<64x8xf32>
    %c0_2 = arith.constant 0 : index
    %c0_3 = arith.constant 0 : index
    %4 = vector.load %arg4[%c0_2, %c0_3] : memref<8x128xf32, #tpu.memory_space<vmem>>, vector<8x128xf32>
    %cst = arith.constant dense<0.000000e+00> : vector<64x128xf32>
    %5 = tpu.matmul %3, %4, %cst {dimension_numbers = #tpu.dot_dimension_numbers<[1], [0], [0], [1], [0, 0, 1, 1], [], []>} : vector<64x8xf32>, vector<8x128xf32>, vector<64x128xf32> -> vector<64x128xf32>
    %c0_4 = arith.constant 0 : index
    %c0_5 = arith.constant 0 : index
    %6 = vector.load %arg3[%c0_4, %c0_5] : memref<64x1xi32, #tpu.memory_space<vmem>>, vector<64x1xi32>
    %c0_6 = arith.constant 0 : index
    %c0_7 = arith.constant 0 : index
    %7 = vector.load %arg5[%c0_6, %c0_7] : memref<1x128xi32, #tpu.memory_space<vmem>>, vector<1x128xi32>
    %8 = vector.broadcast %6 : vector<64x1xi32> to vector<64x128xi32>
    %9 = vector.broadcast %7 : vector<1x128xi32> to vector<64x128xi32>
    %10 = arith.cmpi eq, %8, %9 : vector<64x128xi32>
    %cst_8 = arith.constant 0x7F800000 : f32
    %11 = vector.broadcast %cst_8 : f32 to vector<64x128xf32>
    %12 = arith.select %10, %5, %11 : vector<64x128xi1>, vector<64x128xf32>
    %cst_9 = arith.constant dense<0x7F800000> : vector<64xf32>
    %13 = vector.multi_reduction <minimumf>, %12, %cst_9 [1] : vector<64x128xf32> to vector<64xf32>
    %14 = vector.shape_cast %13 : vector<64xf32> to vector<64x1xf32>
    %15 = tpu.iota {dimensions = array<i32: 1>} : vector<1x128xi32>
    %16 = vector.broadcast %14 : vector<64x1xf32> to vector<64x128xf32>
    %17 = arith.cmpf ole, %12, %16 : vector<64x128xf32>
    %c128_i32 = arith.constant 128 : i32
    %18 = vector.shape_cast %15 : vector<1x128xi32> to vector<1x128xi32>
    %19 = vector.broadcast %18 : vector<1x128xi32> to vector<64x128xi32>
    %20 = vector.broadcast %c128_i32 : i32 to vector<64x128xi32>
    %21 = arith.select %17, %19, %20 : vector<64x128xi1>, vector<64x128xi32>
    %cst_10 = arith.constant dense<2147483647> : vector<64xi32>
    %22 = vector.multi_reduction <minsi>, %21, %cst_10 [1] : vector<64x128xi32> to vector<64xi32>
    %23 = vector.shape_cast %22 : vector<64xi32> to vector<64x1xi32>
    %24 = vector.broadcast %15 : vector<1x128xi32> to vector<64x128xi32>
    %25 = vector.broadcast %23 : vector<64x1xi32> to vector<64x128xi32>
    %26 = arith.cmpi eq, %24, %25 : vector<64x128xi32>
    %27 = arith.extui %26 : vector<64x128xi1> to vector<64x128xi32>
    %28 = arith.sitofp %27 : vector<64x128xi32> to vector<64x128xf32>
    %c0_11 = arith.constant 0 : index
    %c0_12 = arith.constant 0 : index
    %29 = vector.load %arg6[%c0_11, %c0_12] : memref<128x32xf32, #tpu.memory_space<vmem>>, vector<128x32xf32>
    %cst_13 = arith.constant dense<0.000000e+00> : vector<64x32xf32>
    %30 = tpu.matmul %28, %29, %cst_13 {dimension_numbers = #tpu.dot_dimension_numbers<[1], [0], [0], [1], [0, 0, 1, 1], [], []>} : vector<64x128xf32>, vector<128x32xf32>, vector<64x32xf32> -> vector<64x32xf32>
    %c0_14 = arith.constant 0 : index
    %c0_15 = arith.constant 0 : index
    %31 = vector.load %arg12[%c0_14, %c0_15] : memref<64x1xf32, #tpu.memory_space<vmem>>, vector<64x1xf32>
    %32 = arith.cmpf olt, %14, %31 : vector<64x1xf32>
    %c0_16 = arith.constant 0 : index
    %c0_17 = arith.constant 0 : index
    %33 = vector.load %arg12[%c0_16, %c0_17] : memref<64x1xf32, #tpu.memory_space<vmem>>, vector<64x1xf32>
    %34 = arith.select %32, %14, %33 : vector<64x1xi1>, vector<64x1xf32>
    %c0_18 = arith.constant 0 : index
    %c0_19 = arith.constant 0 : index
    %35 = vector.load %arg12[%c0_18, %c0_19] : memref<64x1xf32, #tpu.memory_space<vmem>>, vector<64x1xf32>
    tpu.vector_store %arg12[%c0_18, %c0_19], %34 {strides = array<i32>} : memref<64x1xf32, #tpu.memory_space<vmem>>, vector<64x1xf32>,
    %c0_20 = arith.constant 0 : index
    %c0_21 = arith.constant 0 : index
    %36 = vector.load %arg13[%c0_20, %c0_21] : memref<64x32xf32, #tpu.memory_space<vmem>>, vector<64x32xf32>
    %37 = vector.shape_cast %32 : vector<64x1xi1> to vector<64x1xi1>
    %38 = vector.broadcast %37 : vector<64x1xi1> to vector<64x32xi1>
    %39 = arith.select %38, %30, %36 : vector<64x32xi1>, vector<64x32xf32>
    %c0_22 = arith.constant 0 : index
    %c0_23 = arith.constant 0 : index
    %40 = vector.load %arg13[%c0_22, %c0_23] : memref<64x32xf32, #tpu.memory_space<vmem>>, vector<64x32xf32>
    tpu.vector_store %arg13[%c0_22, %c0_23], %39 {strides = array<i32>} : memref<64x32xf32, #tpu.memory_space<vmem>>, vector<64x32xf32>,
    %c2_i32 = arith.constant 2 : i32
    %41 = arith.cmpi eq, %arg1, %c2_i32 : i32
    %42 = arith.extui %41 : i1 to i32
    %c0_i32_24 = arith.constant 0 : i32
    %43 = arith.cmpi ne, %42, %c0_i32_24 : i32
    scf.if %43 {
      %c0_25 = arith.constant 0 : index
      %c0_26 = arith.constant 0 : index
      %44 = vector.load %arg13[%c0_25, %c0_26] : memref<64x32xf32, #tpu.memory_space<vmem>>, vector<64x32xf32>
      %c0_27 = arith.constant 0 : index
      %c0_28 = arith.constant 0 : index
      %45 = vector.load %arg7[%c0_27, %c0_28] : memref<32x32xf32, #tpu.memory_space<vmem>>, vector<32x32xf32>
      %cst_29 = arith.constant dense<0.000000e+00> : vector<64x32xf32>
      %46 = tpu.matmul %44, %45, %cst_29 {dimension_numbers = #tpu.dot_dimension_numbers<[1], [0], [0], [1], [0, 0, 1, 1], [], []>} : vector<64x32xf32>, vector<32x32xf32>, vector<64x32xf32> -> vector<64x32xf32>
      %c0_30 = arith.constant 0 : index
      %c0_31 = arith.constant 0 : index
      %47 = vector.load %arg8[%c0_30, %c0_31] : memref<1x32xf32, #tpu.memory_space<vmem>>, vector<1x32xf32>
      %48 = vector.broadcast %47 : vector<1x32xf32> to vector<64x32xf32>
      %49 = arith.addf %46, %48 : vector<64x32xf32>
      %50 = arith.negf %49 : vector<64x32xf32>
      %51 = math.exp %50 : vector<64x32xf32>
      %cst_32 = arith.constant 1.000000e+00 : f32
      %52 = vector.broadcast %cst_32 : f32 to vector<64x32xf32>
      %53 = arith.addf %52, %51 : vector<64x32xf32>
      %54 = arith.divf %52, %53 : vector<64x32xf32>
      %55 = arith.mulf %49, %54 : vector<64x32xf32>
      %c0_33 = arith.constant 0 : index
      %c0_34 = arith.constant 0 : index
      %56 = vector.load %arg9[%c0_33, %c0_34] : memref<32x1xf32, #tpu.memory_space<vmem>>, vector<32x1xf32>
      %cst_35 = arith.constant dense<0.000000e+00> : vector<64x1xf32>
      %57 = tpu.matmul %55, %56, %cst_35 {dimension_numbers = #tpu.dot_dimension_numbers<[1], [0], [0], [1], [0, 0, 1, 1], [], []>} : vector<64x32xf32>, vector<32x1xf32>, vector<64x1xf32> -> vector<64x1xf32>
      %c0_36 = arith.constant 0 : index
      %c0_37 = arith.constant 0 : index
      %58 = vector.load %arg10[%c0_36, %c0_37] : memref<1x1xf32, #tpu.memory_space<vmem>>, vector<1x1xf32>
      %59 = vector.broadcast %58 : vector<1x1xf32> to vector<64x1xf32>
      %60 = arith.addf %57, %59 : vector<64x1xf32>
      %61 = arith.negf %60 : vector<64x1xf32>
      %62 = math.exp %61 : vector<64x1xf32>
      %cst_38 = arith.constant 1.000000e+00 : f32
      %63 = vector.broadcast %cst_38 : f32 to vector<64x1xf32>
      %64 = arith.addf %63, %62 : vector<64x1xf32>
      %65 = arith.divf %63, %64 : vector<64x1xf32>
      %c0_39 = arith.constant 0 : index
      %c0_40 = arith.constant 0 : index
      %66 = vector.load %arg11[%c0_39, %c0_40] : memref<64x1xf32, #tpu.memory_space<vmem>>, vector<64x1xf32>
      tpu.vector_store %arg11[%c0_39, %c0_40], %65 {strides = array<i32>} : memref<64x1xf32, #tpu.memory_space<vmem>>, vector<64x1xf32>,
    } else {
    }
    return
  }
  func.func @transform_0(%arg0: i32, %arg1: i32) -> (i32, i32) {
    %c0_i32 = arith.constant 0 : i32
    %c0_i32_0 = arith.constant 0 : i32
    return %arg0, %c0_i32 : i32, i32
  }
  func.func @transform_1(%arg0: i32, %arg1: i32) -> (i32, i32) {
    %c0_i32 = arith.constant 0 : i32
    %c0_i32_0 = arith.constant 0 : i32
    return %arg0, %c0_i32 : i32, i32
  }
  func.func @transform_2(%arg0: i32, %arg1: i32) -> (i32, i32) {
    %c0_i32 = arith.constant 0 : i32
    %c0_i32_0 = arith.constant 0 : i32
    return %c0_i32, %arg1 : i32, i32
  }
  func.func @transform_3(%arg0: i32, %arg1: i32) -> (i32, i32) {
    %c0_i32 = arith.constant 0 : i32
    %c0_i32_0 = arith.constant 0 : i32
    return %c0_i32, %arg1 : i32, i32
  }
  func.func @transform_4(%arg0: i32, %arg1: i32) -> (i32, i32) {
    %c0_i32 = arith.constant 0 : i32
    %c0_i32_0 = arith.constant 0 : i32
    return %arg1, %c0_i32 : i32, i32
  }
  func.func @transform_5(%arg0: i32, %arg1: i32) -> (i32, i32) {
    %c0_i32 = arith.constant 0 : i32
    %c0_i32_0 = arith.constant 0 : i32
    %c0_i32_1 = arith.constant 0 : i32
    return %c0_i32, %c0_i32_0 : i32, i32
  }
  func.func @transform_6(%arg0: i32, %arg1: i32) -> (i32, i32) {
    %c0_i32 = arith.constant 0 : i32
    %c0_i32_0 = arith.constant 0 : i32
    %c0_i32_1 = arith.constant 0 : i32
    return %c0_i32, %c0_i32_0 : i32, i32
  }
  func.func @transform_7(%arg0: i32, %arg1: i32) -> (i32, i32) {
    %c0_i32 = arith.constant 0 : i32
    %c0_i32_0 = arith.constant 0 : i32
    %c0_i32_1 = arith.constant 0 : i32
    return %c0_i32, %c0_i32_0 : i32, i32
  }
  func.func @transform_8(%arg0: i32, %arg1: i32) -> (i32, i32) {
    %c0_i32 = arith.constant 0 : i32
    %c0_i32_0 = arith.constant 0 : i32
    %c0_i32_1 = arith.constant 0 : i32
    return %c0_i32, %c0_i32_0 : i32, i32
  }
  func.func @transform_9(%arg0: i32, %arg1: i32) -> (i32, i32) {
    %c0_i32 = arith.constant 0 : i32
    %c0_i32_0 = arith.constant 0 : i32
    return %arg0, %c0_i32 : i32, i32
  }
}

</mosaic_0001>

<bundles_post_ra>
// kernel: tpu_custom_call.1
= control target key start
LH: loop header
LB: loop body
LE: loop exit
PB: predicated region body
PF: predicated region fallthrough
CT: control target
= control target key end

     0   :  { %s2016_s11 = smov 0   ;;  %s2018_s12 = smov 0   ;;  %s2489_s0 = inlined_call_operand.vmem [shape: f32[192,8], index: 0, kind: input, shape index: {}]   ;;  %s2490_s1 = inlined_call_operand.vmem [shape: s32[192,1], index: 1, kind: input, shape index: {}]   ;;  %s2491_s2 = inlined_call_operand.vmem [shape: f32[8,384], index: 2, kind: input, shape index: {}]   ;;  %s2492_s3 = inlined_call_operand.vmem [shape: s32[1,384], index: 3, kind: input, shape index: {}]   ;;  %s2493_s4 = inlined_call_operand.vmem [shape: f32[384,32], index: 4, kind: input, shape index: {}]   ;;  %s2494_s5 = inlined_call_operand.vmem [shape: f32[32,32], index: 5, kind: input, shape index: {}]   ;;  %s2495_s6 = inlined_call_operand.vmem [shape: f32[1,32], index: 6, kind: input, shape index: {}]   ;;  %s2496_s7 = inlined_call_operand.vmem [shape: f32[32,1], index: 7, kind: input, shape index: {}]   ;;  %s2497_s8 = inlined_call_operand.<no memory space> [shape: f32[1,1], index: 8, kind: input, shape index: {}]   ;;  %s2498_s9 = inlined_call_operand.vmem [shape: f32[192,1], index: 9, kind: output, shape index: {}]  }
   0x1   :  { %v14_v0 = vstv %s2497_s8  ;;  %s2020_s13 = smov 0   ;;  %s2022_s14 = smov 0  }
   0x2   :  { %15 = vst [vmem:[#allocation4] sm:$0x1] %v14_v0  ;;  %s2024_s15 = smov 0  }
   0x3 LB: > { %s30_s8 = sadd.s32 1, %s1949_s13  ;;  %s33_s16 = sadd.s32 1, %s1953_s14  ;;  %s1957_s15 = sphi %s2024_s15, %s21_s15   ;;  %s1953_s14 = sphi %s2022_s14, %s2506_s14   ;;  %s1949_s13 = sphi %s2020_s13, %s2505_s13   ;;  %s1945_s12 = sphi %s2018_s12, %s2504_s12   ;;  %s1941_s11 = sphi %s2016_s11, %s2503_s11  }
   0x4   : > { %p31_p0 = scmp.ge.s32.totalorder %s30_s8, 3  ;;  %p1549_p1 = scmp.ge.s32.totalorder %s1957_s15, 1 }
   0x5   : > { %p341_p2 = scmp.lt.s32.totalorder %s1957_s15, 10 }
   0x6   : > { %s2508_s8 = smov (%p31_p0, %s30_s8), 0  ;;  %s2510_s16 = smov (!%p31_p0, %s33_s16), %s1953_s14 }
   0x7   : > { %2499 = sst [smem:[#allocation5_spill]] %s2508_s8  ;;  %p342_p3 = pnand %p1549_p1, %p341_p2 }
   0x8   : > { %p35_p4 = scmp.ge.s32.totalorder %s2510_s16, 3  ;;  %s1550_s17 = sshll.u32 (!%p342_p3), %s1945_s12, 3 }
   0x9   : > { %345 = sbr.rel (%p342_p3) target bundleno = 1360 (0x550), region = 56  ;;  %p406_p5 = scmp.lt.s32.totalorder (!%p342_p3), %s1941_s11, 2 }
   0xa   : > { %s2512_s16 = smov (%p35_p4, %s2510_s16), 0  ;;  %p395_p6 = scmp.lt.s32.totalorder (!%p342_p3), %s1550_s17, 23 }
   0xb   : > { %2500 = sst [smem:[#allocation6_spill]] %s2512_s16  ;;  %s1555_s18 = sshll.u32 (!%p342_p3), %s1941_s11, 4 }
   0xc   : > { %p414_p7 = scmp.lt.s32.totalorder (!%p342_p3), %s1555_s18, 47  ;;  %p1559_p8 = scmp.ne.s32.totalorder (!%p342_p3), %s1941_s11, 0 }
   0xe   : > { %s2051_s19 = scalar_select %p406_p5, %s1941_s11, 2 }
   0xf   : > { %s2514_s17 = smov (!%p395_p6, %s1550_s17), 23  ;;  %s2516_s18 = smov (!%p414_p7, %s1555_s18), 47 }
  0x10   : > { %s1554_s20 = sshll.u32 %s2051_s19, 3  ;;  %s412_s23 = scalar_lea.vmem %s2492_s3, %s2051_s19 }
  0x11   : > { %s1551_s24 = sshll.u32 %s2514_s17, 3  ;;  %s2061_s27 = scalar_lea.vmem %s2491_s2, %s1554_s20 }
  0x12   : > { %s2066_s30 = scalar_lea.vmem %s2489_s0, %s1551_s24  ;;  %s2071_s16 = scalar_lea.vmem %s2490_s1, %s1551_s24 }
  0x13   : > { %s2076_s17 = scalar_lea.vmem %s2498_s9, %s1551_s24  ;;  %s1556_s22 = sshll.u32 %s2516_s18, 3 }
  0x14   : > { %s2081_s26 = scalar_lea.vmem %s2493_s4, %s1556_s22  ;;  %428 = sbr.rel (%p1559_p8) target bundleno = 34 (0x22), region = 60 }
  0x19   : > { %vm429_vm0 = vcmask 7168   ;;  %vm438_vm1 = vcmask 261120   ;;  %v1959_v1 = vmov inf   ;;  %v1960_v2 = vmov 0.0  }
  0x1a   : > { %430 = vst.msk [vmem:[#allocation2] sm:$0xff] %vm429_vm0, %v1959_v1  ;;  %431 = vst.msk [vmem:[#allocation2 + $0x8] sm:$0xff] %vm429_vm0, %v1959_v1 }
  0x1b   : > { %432 = vst.msk [vmem:[#allocation2 + $0x10] sm:$0xff] %vm429_vm0, %v1959_v1  ;;  %433 = vst.msk [vmem:[#allocation2 + $0x18] sm:$0xff] %vm429_vm0, %v1959_v1 }
  0x1c   : > { %434 = vst.msk [vmem:[#allocation2 + $0x20] sm:$0xff] %vm429_vm0, %v1959_v1  ;;  %435 = vst.msk [vmem:[#allocation2 + $0x28] sm:$0xff] %vm429_vm0, %v1959_v1 }
  0x1d   : > { %436 = vst.msk [vmem:[#allocation2 + $0x30] sm:$0xff] %vm429_vm0, %v1959_v1  ;;  %437 = vst.msk [vmem:[#allocation2 + $0x38] sm:$0xff] %vm429_vm0, %v1959_v1 }
  0x1e   : > { %439 = vst.msk [vmem:[#allocation3] sm:$0xff] %vm438_vm1, %v1960_v2  ;;  %440 = vst.msk [vmem:[#allocation3 + $0x8] sm:$0xff] %vm438_vm1, %v1960_v2 }
  0x1f   : > { %441 = vst.msk [vmem:[#allocation3 + $0x10] sm:$0xff] %vm438_vm1, %v1960_v2  ;;  %442 = vst.msk [vmem:[#allocation3 + $0x18] sm:$0xff] %vm438_vm1, %v1960_v2 }
  0x20   : > { %443 = vst.msk [vmem:[#allocation3 + $0x20] sm:$0xff] %vm438_vm1, %v1960_v2  ;;  %444 = vst.msk [vmem:[#allocation3 + $0x28] sm:$0xff] %vm438_vm1, %v1960_v2 }
  0x21   : > { %445 = vst.msk [vmem:[#allocation3 + $0x30] sm:$0xff] %vm438_vm1, %v1960_v2  ;;  %446 = vst.msk [vmem:[#allocation3 + $0x38] sm:$0xff] %vm438_vm1, %v1960_v2 }
  0x22 PF: > { %v455_v3 = vld [vmem:[%s2061_s27] sm:$0xff]  ;;  %vm456_vm2 = vcmask 64512   ;;  %v448_v5 = vld [vmem:[%s2066_s30 + $0x8] sm:$0xff]  ;;  %v449_v6 = vld [vmem:[%s2066_s30 + $0x10] sm:$0xff]  ;;  %v1961_v7 = vmov 0   ;;  %v655_v46 = vlaneseq  ;;  %vm954_vm11 = vcmask 7168  }
  0x23   : > { %v447_v4 = vld [vmem:[%s2066_s30] sm:$0xff]  ;;  %1679 = vmatprep.subr.mxu0 %v455_v3  ;;  %1853 = vset.pattern.permute.xlu0 %v1961_v7  ;;  %v588_v8 = vld [vmem:[%s2071_s16 + $0x10] sm:$0xff]  ;;  %v450_v10 = vld [vmem:[%s2066_s30 + $0x18] sm:$0xff]  ;;  %p1585_p9 = scmp.ne.s32.totalorder %s1941_s11, 2 }
  0x24   : > { %1681 = vmatprep.mubr.msk.f32.mxu0 %vm456_vm2, %v447_v4  ;;  %1680 = vmatpush3.msra.mxu0 %v455_v3  ;;  %v590_v9 = vld [vmem:[%s2071_s16 + $0x20] sm:$0xff]  ;;  %v589_v12 = vld [vmem:[%s2071_s16 + $0x18] sm:$0xff]  ;;  %v591_v13 = vld [vmem:[%s2071_s16 + $0x28] sm:$0xff]  ;;  %v2136_v47 = vand.u32 127, %v655_v46 }
  0x25   : > { %1682 = vmatmul.mubr.msk.f32.vlgmr.msra.gmra.mxu0 %vm456_vm2, %v448_v5  ;;  %1854 = vset.pattern.permute.xlu1 %v1961_v7  ;;  %v451_v11 = vld [vmem:[%s2066_s30 + $0x20] sm:$0xff]  ;;  %v452_v14 = vld [vmem:[%s2066_s30 + $0x28] sm:$0xff]  ;;  %v453_v15 = vld [vmem:[%s2066_s30 + $0x30] sm:$0xff] }
  0x26   : > { %1684 = vmatprep.mubr.msk.f32.mxu0 %vm456_vm2, %v449_v6  ;;  %602 = vperm.xlu0 %1853, %v588_v8   ;;  %v586_v16 = vld [vmem:[%s2071_s16] sm:$0xff]  ;;  %v592_v17 = vld [vmem:[%s2071_s16 + $0x30] sm:$0xff]  ;;  %v454_v18 = vld [vmem:[%s2066_s30 + $0x38] sm:$0xff] }
  0x27   : > { %608 = vperm.xlu1 %1854, %v590_v9   ;;  %v587_v19 = vld [vmem:[%s2071_s16 + $0x8] sm:$0xff]  ;;  %v593_v20 = vld [vmem:[%s2071_s16 + $0x38] sm:$0xff]  ;;  %v1568_v24 = vld [vmem:[%s412_s23] ss:$0 sm:$0xff] }
  0x28   : > { %v2138_v48 = vld [vmem:[#allocation2 + $0x18] sm:$0xff]  ;;  %v2142_v50 = vld [vmem:[#allocation2 + $0x10] sm:$0xff]  ;;  %v2159_v55 = vld [vmem:[#allocation2] sm:$0xff] }
  0x29   : > { %1685 = vmatmul.mubr.msk.f32.gmra.mxu0 %vm456_vm2, %v450_v10  ;;  %v2186_v63 = vld [vmem:[#allocation2 + $0x8] sm:$0xff]  ;;  %v2209_v6 = vld [vmem:[#allocation2 + $0x20] sm:$0xff] }
  0x2a   : > { %1687 = vmatprep.mubr.msk.f32.mxu0 %vm456_vm2, %v451_v11  ;;  %605 = vperm.xlu0 %1853, %v589_v12   ;;  %v2200_v3 = vld [vmem:[#allocation2 + $0x28] sm:$0xff] }
  0x2b   : > { %611 = vperm.xlu1 %1854, %v591_v13   ;;  %v2234_v13 = vld [vmem:[#allocation2 + $0x30] sm:$0xff] }
  0x2d   : > { %1688 = vmatmul.mubr.msk.f32.gmra.mxu0 %vm456_vm2, %v452_v14 }
  0x2e   : > { %1690 = vmatprep.mubr.msk.f32.mxu0 %vm456_vm2, %v453_v15  ;;  %596 = vperm.xlu0 %1853, %v586_v16  }
  0x2f   : > { %614 = vperm.xlu1 %1854, %v592_v17  }
  0x31   : > { %1691 = vmatmul.mubr.msk.f32.gmra.mxu0 %vm456_vm2, %v454_v18 }
  0x32   : > { %599 = vperm.xlu0 %1853, %v587_v19  }
  0x33   : > { %617 = vperm.xlu1 %1854, %v593_v20  }
  0xa1   : > { %v603_v21 = vpop.permute.xlu0 %602 }
  0xa2   : > { %v609_v25 = vpop.permute.xlu1 %608  ;;  %vm625_vm4 = vcmp.eq.s32.totalorder %v603_v21, %v1568_v24  ;;  %v2263_v21 = vld [vmem:[#allocation2 + $0x38] sm:$0xff] }
  0xa3   : > { %vm627_vm8 = vcmp.eq.s32.totalorder %v609_v25, %v1568_v24 }
  0xa5   : > { %v606_v22 = vpop.permute.xlu0 %605 }
  0xa6   : > { %vm626_vm3 = vcmp.eq.s32.totalorder %v606_v22, %v1568_v24  ;;  %v612_v31 = vpop.permute.xlu1 %611 }
  0xa7   : > { %vm628_vm6 = vcmp.eq.s32.totalorder %v612_v31, %v1568_v24 }
  0xa9   : > { %v597_v26 = vpop.permute.xlu0 %596 }
  0xaa   : > { %vm623_vm5 = vcmp.eq.s32.totalorder %v597_v26, %v1568_v24  ;;  %v615_v39 = vpop.permute.xlu1 %614 }
  0xab   : > { %vm629_vm9 = vcmp.eq.s32.totalorder %v615_v39, %v1568_v24  ;;  %v818_v39 = vld [vmem:[%s2081_s26 + $0x48] sm:$0xff] }
  0xad   : > { %v600_v32 = vpop.permute.xlu0 %599 }
  0xae   : > { %vm624_vm7 = vcmp.eq.s32.totalorder %v600_v32, %v1568_v24  ;;  %v618_v43 = vpop.permute.xlu1 %617 }
  0xaf   : > { %vm630_vm10 = vcmp.eq.s32.totalorder %v618_v43, %v1568_v24  ;;  %v814_v43 = vld [vmem:[%s2081_s26 + $0x28] sm:$0xff] }
  0xe5   : > { %v1683_v23 = vpop.f32.mrf.mxu0 }
  0xe6   : > { %v2127_v40 = vsel %vm624_vm7, %v1683_v23, inf }
  0xe7   : > { %v547_v27 = vpop.f32.mrf.mxu0 }
  0xe8   : > { %v2124_v35 = vsel %vm623_vm5, %v547_v27, inf }
  0xe9   : > { %v1686_v28 = vpop.f32.mrf.mxu0 }
  0xea   : > { %v634_v29 = vsel %vm626_vm3, %v1686_v28, inf }
  0xeb   : > { %645 = vmin.xlane.f32.xlu1 %v634_v29  ;;  %v557_v30 = vpop.f32.mrf.mxu0 }
  0xec   : > { %v633_v33 = vsel %vm625_vm4, %v557_v30, inf }
  0xed   : > { %643 = vmin.xlane.f32.xlu0 %v633_v33  ;;  %v1689_v34 = vpop.f32.mrf.mxu0 }
  0xee   : > { %v636_v37 = vsel %vm628_vm6, %v1689_v34, inf  ;;  %v823_v34 = vld [vmem:[%s2081_s26 + $0x70] sm:$0xff] }
  0xef   : > { %639 = vmin.xlane.f32.xlu1 %v2124_v35  ;;  %v567_v36 = vpop.f32.mrf.mxu0 }
  0xf0   : > { %v635_v41 = vsel %vm627_vm8, %v567_v36, inf  ;;  %v821_v36 = vld [vmem:[%s2081_s26 + $0x60] sm:$0xff] }
  0xf1   : > { %649 = vmin.xlane.f32.xlu0 %v636_v37  ;;  %v1692_v38 = vpop.f32.mrf.mxu0 }
  0xf2   : > { %v2133_v45 = vsel %vm630_vm10, %v1692_v38, inf  ;;  %v819_v38 = vld [vmem:[%s2081_s26 + $0x50] sm:$0xff] }
  0xf3   : > { %641 = vmin.xlane.f32.xlu1 %v2127_v40  ;;  %v577_v42 = vpop.f32.mrf.mxu0 }
  0xf4   : > { %v2130_v44 = vsel %vm629_vm9, %v577_v42, inf  ;;  %v815_v42 = vld [vmem:[%s2081_s26 + $0x30] sm:$0xff] }
  0xf5   : > { %647 = vmin.xlane.f32.xlu0 %v635_v41 }
  0xf9   : > { %651 = vmin.xlane.f32.xlu0 %v2130_v44 }
  0xfd   : > { %653 = vmin.xlane.f32.xlu0 %v2133_v45 }
 0x174   : > { %v2140_v49 = vpop.xlane.xlu1 %645 }
 0x175   : > { %vm660_vm12 = vcmp.le.f32.partialorder %v634_v29, %v2140_v49  ;;  %vm941_vm13 = vcmp.lt.f32.partialorder %v2140_v49, %v2138_v48 }
 0x176   : > { %v2147_v51 = vpop.xlane.xlu0 %643  ;;  %v2150_v52 = vsel %vm660_vm12, %v2136_v47, 128  ;;  %v949_v53 = vsel %vm941_vm13, %v2140_v49, %v2138_v48 }
 0x177   : > { %vm659_vm14 = vcmp.le.f32.partialorder %v633_v33, %v2147_v51  ;;  %v716_v54 = vshra.s32 %v2150_v52, 16  ;;  %vm940_vm15 = vcmp.lt.f32.partialorder %v2147_v51, %v2142_v50  ;;  %958 = vst.msk [vmem:[#allocation2 + $0x18] sm:$0xff] %vm954_vm11, %v949_v53  ;;  %v824_v33 = vld [vmem:[%s2081_s26 + $0x78] sm:$0xff] }
 0x178   : > { %v2164_v56 = vpop.xlane.xlu1 %639  ;;  %v2167_v57 = vsel %vm659_vm14, %v2136_v47, 128  ;;  %v948_v58 = vsel %vm940_vm15, %v2147_v51, %v2142_v50  ;;  %1777 = vmatprep.subr.mxu1 %v824_v33  ;;  %1693 = vmatprep.subr.mxu0 %v824_v33 }
 0x179   : > { %v2174_v59 = vcvt.s32.f32 %v716_v54  ;;  %v702_v60 = vshra.s32 %v2167_v57, 16  ;;  %957 = vst.msk [vmem:[#allocation2 + $0x10] sm:$0xff] %vm954_vm11, %v948_v58  ;;  %vm938_vm0 = vcmp.lt.f32.partialorder %v2164_v56, %v2159_v55  ;;  %vm657_vm2 = vcmp.le.f32.partialorder %v2124_v35, %v2164_v56  ;;  %1793 = vmatpush3.msra.mxu1 %v824_v33  ;;  %v822_v35 = vld [vmem:[%s2081_s26 + $0x68] sm:$0xff]  ;;  %1694 = vmatpush3.msra.mxu0 %v824_v33 }
 0x17a   : > { %v2178_v61 = vpop.xlane.xlu0 %649  ;;  %v946_v2 = vsel %vm938_vm0, %v2164_v56, %v2159_v55  ;;  %v2215_v9 = vsel %vm657_vm2, %v2136_v47, 128  ;;  %1778 = vmatprep.subr.mxu1 %v823_v34  ;;  %1695 = vmatprep.subr.mxu0 %v823_v34  ;;  %v701_v46 = vand.u32 65535, %v2167_v57 }
 0x17b   : > { %vm662_vm1 = vcmp.le.f32.partialorder %v636_v37, %v2178_v61  ;;  %719 = vmin.xlane.f32.xlu0 %v2174_v59  ;;  %v2184_v62 = vcvt.s32.f32 %v702_v60  ;;  %955 = vst.msk [vmem:[#allocation2] sm:$0xff] %vm954_vm11, %v946_v2  ;;  %vm943_vm5 = vcmp.lt.f32.partialorder %v2178_v61, %v2200_v3  ;;  %v674_v15 = vshra.s32 %v2215_v9, 16  ;;  %1794 = vmatpush3.msra.mxu1 %v823_v34  ;;  %v820_v37 = vld [vmem:[%s2081_s26 + $0x58] sm:$0xff] }
 0x17c   : > { %v2190_v0 = vpop.xlane.xlu1 %641  ;;  %v2193_v1 = vsel %vm662_vm1, %v2136_v47, 128  ;;  %v951_v17 = vsel %vm943_vm5, %v2178_v61, %v2200_v3  ;;  %1696 = vmatpush3.msra.mxu0 %v823_v34  ;;  %1779 = vmatprep.subr.mxu1 %v822_v35  ;;  %v703_v2 = vcvt.s32.f32 %v701_v46  ;;  %v976_v50 = vsel %vm943_vm5, 1, %v1961_v7 }
 0x17d   : > { %705 = vmin.xlane.f32.xlu1 %v2184_v62  ;;  %v744_v4 = vshra.s32 %v2193_v1, 16  ;;  %vm939_vm3 = vcmp.lt.f32.partialorder %v2190_v0, %v2186_v63  ;;  %vm658_vm6 = vcmp.le.f32.partialorder %v2127_v40, %v2190_v0  ;;  %960 = vst.msk [vmem:[#allocation2 + $0x28] sm:$0xff] %vm954_vm11, %v951_v17  ;;  %v2274_v25 = vcvt.s32.f32 %v674_v15  ;;  %1697 = vmatprep.subr.mxu0 %v822_v35  ;;  %v817_v40 = vld [vmem:[%s2081_s26 + $0x40] sm:$0xff] }
 0x17e   : > { %v2205_v5 = vpop.xlane.xlu0 %647  ;;  %v947_v11 = vsel %vm939_vm3, %v2190_v0, %v2186_v63  ;;  %v2259_v20 = vsel %vm658_vm6, %v2136_v47, 128  ;;  %1795 = vmatpush3.msra.mxu1 %v822_v35  ;;  %1698 = vmatpush3.msra.mxu0 %v822_v35 }
 0x17f   : > { %vm661_vm4 = vcmp.le.f32.partialorder %v635_v41, %v2205_v5  ;;  %v2212_v8 = vcvt.s32.f32 %v744_v4  ;;  %956 = vst.msk [vmem:[#allocation2 + $0x8] sm:$0xff] %vm954_vm11, %v947_v11  ;;  %vm942_vm7 = vcmp.lt.f32.partialorder %v2205_v5, %v2209_v6  ;;  %v688_v27 = vshra.s32 %v2259_v20, 16  ;;  %1780 = vmatprep.subr.mxu1 %v821_v36  ;;  %1699 = vmatprep.subr.mxu0 %v821_v36  ;;  %v816_v41 = vld [vmem:[%s2081_s26 + $0x38] sm:$0xff] }
 0x180   : > { %v2220_v10 = vsel %vm661_vm4, %v2136_v47, 128  ;;  %v950_v16 = vsel %vm942_vm7, %v2205_v5, %v2209_v6  ;;  %1796 = vmatpush3.msra.mxu1 %v821_v36  ;;  %1700 = vmatpush3.msra.mxu0 %v821_v36  ;;  %v743_v4 = vand.u32 65535, %v2193_v1  ;;  %v809_v36 = vld [vmem:[%s2081_s26] sm:$0xff]  ;;  %v975_v55 = vsel %vm942_vm7, 1, %v1961_v7 }
 0x181   : > { %747 = vmin.xlane.f32.xlu0 %v2212_v8  ;;  %v730_v12 = vshra.s32 %v2220_v10, 16  ;;  %959 = vst.msk [vmem:[#allocation2 + $0x20] sm:$0xff] %vm954_vm11, %v950_v16  ;;  %v2296_v31 = vcvt.s32.f32 %v688_v27  ;;  %1781 = vmatprep.subr.mxu1 %v820_v37  ;;  %v673_v16 = vand.u32 65535, %v2215_v9  ;;  %v687_v27 = vand.u32 65535, %v2259_v20  ;;  %v812_v9 = vld [vmem:[%s2081_s26 + $0x18] sm:$0xff] }
 0x182   : > { %v2236_v14 = vpop.xlane.xlu0 %651  ;;  %1701 = vmatprep.subr.mxu0 %v820_v37  ;;  %1797 = vmatpush3.msra.mxu1 %v820_v37  ;;  %v745_v57 = vcvt.s32.f32 %v743_v4 }
 0x183   : > { %vm663_vm8 = vcmp.le.f32.partialorder %v2130_v44, %v2236_v14  ;;  %v2251_v18 = vcvt.s32.f32 %v730_v12  ;;  %vm944_vm9 = vcmp.lt.f32.partialorder %v2236_v14, %v2234_v13  ;;  %1702 = vmatpush3.msra.mxu0 %v820_v37  ;;  %1782 = vmatprep.subr.mxu1 %v819_v38  ;;  %v813_v44 = vld [vmem:[%s2081_s26 + $0x20] sm:$0xff]  ;;  %v729_v12 = vand.u32 65535, %v2220_v10 }
 0x184   : > { %v2256_v19 = vsel %vm663_vm8, %v2136_v47, 128  ;;  %v952_v23 = vsel %vm944_vm9, %v2236_v14, %v2234_v13  ;;  %1703 = vmatprep.subr.mxu0 %v819_v38  ;;  %1798 = vmatpush3.msra.mxu1 %v819_v38  ;;  %v972_v37 = vsel %vm939_vm3, 1, %v1961_v7  ;;  %v977_v51 = vsel %vm944_vm9, 1, %v1961_v7 }
 0x185   : > { %733 = vmin.xlane.f32.xlu1 %v2251_v18  ;;  %v758_v22 = vshra.s32 %v2256_v19, 16  ;;  %961 = vst.msk [vmem:[#allocation2 + $0x30] sm:$0xff] %vm954_vm11, %v952_v23  ;;  %1704 = vmatpush3.msra.mxu0 %v819_v38  ;;  %v731_v1 = vcvt.s32.f32 %v729_v12  ;;  %v974_v38 = vsel %vm941_vm13, 1, %v1961_v7 }
 0x186   : > { %v2272_v24 = vpop.xlane.xlu0 %653  ;;  %1783 = vmatprep.subr.mxu1 %v818_v39  ;;  %1705 = vmatprep.subr.mxu0 %v818_v39 }
 0x187   : > { %vm664_vm10 = vcmp.le.f32.partialorder %v2133_v45, %v2272_v24  ;;  %v2279_v26 = vcvt.s32.f32 %v758_v22  ;;  %vm945_vm12 = vcmp.lt.f32.partialorder %v2272_v24, %v2263_v21  ;;  %1799 = vmatpush3.msra.mxu1 %v818_v39  ;;  %1706 = vmatpush3.msra.mxu0 %v818_v39  ;;  %v715_v45 = vand.u32 65535, %v2150_v52 }
 0x188   : > { %v2285_v28 = vsel %vm664_vm10, %v2136_v47, 128  ;;  %v953_v29 = vsel %vm945_vm12, %v2272_v24, %v2263_v21  ;;  %1784 = vmatprep.subr.mxu1 %v817_v40  ;;  %1707 = vmatprep.subr.mxu0 %v817_v40  ;;  %v978_v48 = vsel %vm945_vm12, 1, %v1961_v7  ;;  %v1962_v21 = vmov 1.0  }
 0x189   : > { %677 = vmin.xlane.f32.xlu1 %v2274_v25  ;;  %761 = vmin.xlane.f32.xlu0 %v2279_v26  ;;  %v772_v30 = vshra.s32 %v2285_v28, 16  ;;  %962 = vst.msk [vmem:[#allocation2 + $0x38] sm:$0xff] %vm954_vm11, %v953_v29  ;;  %v717_v54 = vcvt.s32.f32 %v715_v45  ;;  %v771_v29 = vand.u32 65535, %v2285_v28  ;;  %v689_v28 = vcvt.s32.f32 %v687_v27 }
 0x18a   : > { %1800 = vmatpush3.msra.mxu1 %v817_v40  ;;  %1708 = vmatpush3.msra.mxu0 %v817_v40 }
 0x18b   : > { %v2298_v32 = vcvt.s32.f32 %v772_v30  ;;  %1785 = vmatprep.subr.mxu1 %v816_v41  ;;  %1709 = vmatprep.subr.mxu0 %v816_v41  ;;  %v811_v30 = vld [vmem:[%s2081_s26 + $0x10] sm:$0xff]  ;;  %v773_v34 = vcvt.s32.f32 %v771_v29 }
 0x18c   : > { %1801 = vmatpush3.msra.mxu1 %v816_v41  ;;  %1710 = vmatpush3.msra.mxu0 %v816_v41 }
 0x18d   : > { %691 = vmin.xlane.f32.xlu1 %v2296_v31  ;;  %775 = vmin.xlane.f32.xlu0 %v2298_v32 }
 0x18e   : > { %1786 = vmatprep.subr.mxu1 %v815_v42  ;;  %1711 = vmatprep.subr.mxu0 %v815_v42 }
 0x18f   : > { %1802 = vmatpush3.msra.mxu1 %v815_v42  ;;  %1712 = vmatpush3.msra.mxu0 %v815_v42 }
 0x190   : > { %1787 = vmatprep.subr.mxu1 %v814_v43  ;;  %1713 = vmatprep.subr.mxu0 %v814_v43 }
 0x191   : > { %1803 = vmatpush3.msra.mxu1 %v814_v43  ;;  %1714 = vmatpush3.msra.mxu0 %v814_v43 }
 0x192   : > { %1788 = vmatprep.subr.mxu1 %v813_v44  ;;  %1715 = vmatprep.subr.mxu0 %v813_v44 }
 0x193   : > { %1804 = vmatpush3.msra.mxu1 %v813_v44  ;;  %1716 = vmatpush3.msra.mxu0 %v813_v44 }
 0x194   : > { %1789 = vmatprep.subr.mxu1 %v812_v9  ;;  %1717 = vmatprep.subr.mxu0 %v812_v9 }
 0x195   : > { %1805 = vmatpush3.msra.mxu1 %v812_v9  ;;  %1718 = vmatpush3.msra.mxu0 %v812_v9 }
 0x196   : > { %1790 = vmatprep.subr.mxu1 %v811_v30  ;;  %1719 = vmatprep.subr.mxu0 %v811_v30 }
 0x197   : > { %1806 = vmatpush3.msra.mxu1 %v811_v30  ;;  %1720 = vmatpush3.msra.mxu0 %v811_v30  ;;  %v965_v30 = vld [vmem:[#allocation3 + $0x10] sm:$0xff] }
 0x204   : > { %v2316_v53 = vpop.xlane.xlu0 %719 }
 0x205   : > { %vm721_vm14 = vcmp.eq.f32.partialorder %v2174_v59, %v2316_v53  ;;  %v726_v49 = vcvt.f32.s32 %v2316_v53 }
 0x206   : > { %v2320_v58 = vpop.xlane.xlu1 %705  ;;  %v722_v60 = vsel %vm721_vm14, %v717_v54, inf }
 0x207   : > { %723 = vmin.xlane.f32.xlu0 %v722_v60  ;;  %vm707_vm1 = vcmp.eq.f32.partialorder %v2184_v62, %v2320_v58  ;;  %v757_v62 = vand.u32 65535, %v2256_v19  ;;  %v712_v56 = vcvt.f32.s32 %v2320_v58  ;;  %v727_v0 = vshll.u32 %v726_v49, 16 }
 0x208   : > { %v708_v11 = vsel %vm707_vm1, %v703_v2, inf  ;;  %vm1019_vm1 = vcmask 261120  }
 0x209   : > { %709 = vmin.xlane.f32.xlu1 %v708_v11  ;;  %v759_v23 = vcvt.s32.f32 %v757_v62  ;;  %v713_v5 = vshll.u32 %v712_v56, 16  ;;  %v963_v56 = vld [vmem:[#allocation3] sm:$0xff] }
 0x20a   : > { %v2325_v52 = vpop.xlane.xlu0 %747 }
 0x20b   : > { %vm749_vm2 = vcmp.eq.f32.partialorder %v2212_v8, %v2325_v52  ;;  %v675_v8 = vcvt.s32.f32 %v673_v16  ;;  %v754_v14 = vcvt.f32.s32 %v2325_v52 }
 0x20c   : > { %v750_v59 = vsel %vm749_vm2, %v745_v57, inf }
 0x20d   : > { %751 = vmin.xlane.f32.xlu0 %v750_v59  ;;  %v755_v24 = vshll.u32 %v754_v14, 16 }
 0x20e   : > { %v2330_v15 = vpop.xlane.xlu1 %733 }
 0x20f   : > { %vm735_vm4 = vcmp.eq.f32.partialorder %v2251_v18, %v2330_v15  ;;  %v740_v41 = vcvt.f32.s32 %v2330_v15 }
 0x210   : > { %v736_v17 = vsel %vm735_vm4, %v731_v1, inf }
 0x211   : > { %737 = vmin.xlane.f32.xlu1 %v736_v17  ;;  %v741_v44 = vshll.u32 %v740_v41, 16 }
 0x212   : > { %v2336_v10 = vpop.xlane.xlu1 %677  ;;  %v2338_v22 = vpop.xlane.xlu0 %761 }
 0x213   : > { %vm679_vm6 = vcmp.eq.f32.partialorder %v2274_v25, %v2336_v10  ;;  %vm763_vm8 = vcmp.eq.f32.partialorder %v2279_v26, %v2338_v22  ;;  %v810_v25 = vld [vmem:[%s2081_s26 + $0x8] sm:$0xff]  ;;  %v684_v42 = vcvt.f32.s32 %v2336_v10  ;;  %v768_v45 = vcvt.f32.s32 %v2338_v22 }
 0x214   : > { %v680_v18 = vsel %vm679_vm6, %v675_v8, inf  ;;  %v764_v19 = vsel %vm763_vm8, %v759_v23, inf  ;;  %1791 = vmatprep.subr.mxu1 %v810_v25  ;;  %1721 = vmatprep.subr.mxu0 %v810_v25 }
 0x215   : > { %681 = vmin.xlane.f32.xlu1 %v680_v18  ;;  %765 = vmin.xlane.f32.xlu0 %v764_v19  ;;  %v685_v58 = vshll.u32 %v684_v42, 16  ;;  %v769_v52 = vshll.u32 %v768_v45, 16  ;;  %v966_v18 = vld [vmem:[#allocation3 + $0x18] sm:$0xff] }
 0x216   : > { %v2348_v33 = vpop.xlane.xlu1 %691  ;;  %v2350_v20 = vpop.xlane.xlu0 %775  ;;  %1807 = vmatpush3.msra.mxu1 %v810_v25  ;;  %1722 = vmatpush3.msra.mxu0 %v810_v25  ;;  %v968_v25 = vld [vmem:[#allocation3 + $0x28] sm:$0xff] }
 0x217   : > { %vm693_vm10 = vcmp.eq.f32.partialorder %v2296_v31, %v2348_v33  ;;  %vm777_vm14 = vcmp.eq.f32.partialorder %v2298_v32, %v2350_v20  ;;  %1792 = vmatprep.subr.mxu1 %v809_v36  ;;  %1723 = vmatprep.subr.mxu0 %v809_v36  ;;  %v971_v31 = vsel %vm938_vm0, 1, %v1961_v7  ;;  %v973_v32 = vsel %vm940_vm15, 1, %v1961_v7 }
 0x218   : > { %v694_v26 = vsel %vm693_vm10, %v689_v28, inf  ;;  %v778_v35 = vsel %vm777_vm14, %v773_v34, inf  ;;  %1808 = vmatpush3.msra.mxu1 %v809_v36  ;;  %1724 = vmatpush3.msra.mxu0 %v809_v36  ;;  %v698_v60 = vcvt.f32.s32 %v2348_v33  ;;  %v782_v2 = vcvt.f32.s32 %v2350_v20  ;;  %v967_v36 = vld [vmem:[#allocation3 + $0x20] sm:$0xff] }
 0x219   : > { %695 = vmin.xlane.f32.xlu1 %v694_v26  ;;  %779 = vmin.xlane.f32.xlu0 %v778_v35 }
 0x21a   : > { %v699_v1 = vshll.u32 %v698_v60, 16  ;;  %v783_v16 = vshll.u32 %v782_v2, 16 }
 0x22a   : > { %980 = vperm.xlu1 %1854, %v971_v31  }
 0x22e   : > { %986 = vperm.xlu1 %1854, %v973_v32  }
 0x22f   : > { %983 = vperm.xlu0 %1853, %v972_v37  }
 0x232   : > { %989 = vperm.xlu1 %1854, %v974_v38  }
 0x233   : > { %992 = vperm.xlu0 %1853, %v975_v55   ;;  %v964_v55 = vld [vmem:[#allocation3 + $0x8] sm:$0xff] }
 0x236   : > { %995 = vperm.xlu1 %1854, %v976_v50   ;;  %v970_v50 = vld [vmem:[#allocation3 + $0x38] sm:$0xff] }
 0x237   : > { %998 = vperm.xlu0 %1853, %v977_v51  }
 0x23a   : > { %1001 = vperm.xlu1 %1854, %v978_v48  }
 0x290   : > { %v724_v63 = vpop.xlane.xlu0 %723 }
 0x291   : > { %v725_v61 = vcvt.f32.s32 %v724_v63  ;;  %v969_v63 = vld [vmem:[#allocation3 + $0x30] sm:$0xff] }
 0x292   : > { %v710_v3 = vpop.xlane.xlu1 %709 }
 0x293   : > { %v711_v6 = vcvt.f32.s32 %v710_v3  ;;  %v728_v39 = vadd.s32 %v727_v0, %v725_v61 }
 0x295   : > { %v714_v13 = vadd.s32 %v713_v5, %v711_v6  ;;  %vm788_vm15 = vcmp.eq.s32.totalorder %v2136_v47, %v728_v39 }
 0x296   : > { %v752_v40 = vpop.xlane.xlu0 %751 }
 0x297   : > { %vm787_vm13 = vcmp.eq.s32.totalorder %v2136_v47, %v714_v13  ;;  %v753_v7 = vcvt.f32.s32 %v752_v40 }
 0x298   : > { %1728 = vmatprep.mubr.msk.f32.mxu1 %vm787_vm13, %v1962_v21 }
 0x299   : > { %1729 = vmatmul.mubr.msk.f32.vlgmr.msra.gmra.mxu1 %vm788_vm15, %v1962_v21  ;;  %v756_v53 = vadd.s32 %v755_v24, %v753_v7 }
 0x29a   : > { %v738_v43 = vpop.xlane.xlu1 %737 }
 0x29b   : > { %v739_v46 = vcvt.f32.s32 %v738_v43  ;;  %vm790_vm3 = vcmp.eq.s32.totalorder %v2136_v47, %v756_v53 }
 0x29d   : > { %v742_v54 = vadd.s32 %v741_v44, %v739_v46 }
 0x29e   : > { %v682_v4 = vpop.xlane.xlu1 %681  ;;  %v766_v11 = vpop.xlane.xlu0 %765 }
 0x29f   : > { %v683_v57 = vcvt.f32.s32 %v682_v4  ;;  %v767_v12 = vcvt.f32.s32 %v766_v11  ;;  %vm789_vm0 = vcmp.eq.s32.totalorder %v2136_v47, %v742_v54 }
 0x2a0   : > { %1731 = vmatprep.mubr.msk.f32.mxu1 %vm789_vm0, %v1962_v21 }
 0x2a1   : > { %v686_v59 = vadd.s32 %v685_v58, %v683_v57  ;;  %v770_v15 = vadd.s32 %v769_v52, %v767_v12  ;;  %1732 = vmatmul.mubr.msk.f32.gmra.mxu1 %vm790_vm3, %v1962_v21 }
 0x2a2   : > { %v696_v62 = vpop.xlane.xlu1 %695  ;;  %v780_v17 = vpop.xlane.xlu0 %779 }
 0x2a3   : > { %v697_v10 = vcvt.f32.s32 %v696_v62  ;;  %v781_v22 = vcvt.f32.s32 %v780_v17  ;;  %vm785_vm5 = vcmp.eq.s32.totalorder %v2136_v47, %v686_v59  ;;  %vm791_vm7 = vcmp.eq.s32.totalorder %v2136_v47, %v770_v15 }
 0x2a4   : > { %1725 = vmatprep.mubr.msk.f32.mxu0 %vm785_vm5, %v1962_v21  ;;  %1734 = vmatprep.mubr.msk.f32.mxu1 %vm791_vm7, %v1962_v21 }
 0x2a5   : > { %v700_v8 = vadd.s32 %v699_v1, %v697_v10  ;;  %v784_v23 = vadd.s32 %v783_v16, %v781_v22 }
 0x2a6   : > { %v981_v27 = vpop.permute.xlu1 %980 }
 0x2a7   : > { %vm786_vm9 = vcmp.eq.s32.totalorder %v2136_v47, %v700_v8  ;;  %vm792_vm12 = vcmp.eq.s32.totalorder %v2136_v47, %v784_v23  ;;  %vm1003_vm13 = vcmp.eq.s32.totalorder %v981_v27, 1 }
 0x2a8   : > { %1726 = vmatmul.mubr.msk.f32.vlgmr.msra.gmra.mxu0 %vm786_vm9, %v1962_v21  ;;  %1735 = vmatmul.mubr.msk.f32.gmra.mxu1 %vm792_vm12, %v1962_v21 }
 0x2aa   : > { %v987_v29 = vpop.permute.xlu1 %986  ;;  %v984_v33 = vpop.permute.xlu0 %983 }
 0x2ab   : > { %vm1005_vm4 = vcmp.eq.s32.totalorder %v987_v29, 1  ;;  %vm1004_vm10 = vcmp.eq.s32.totalorder %v984_v33, 1 }
 0x2ae   : > { %v990_v9 = vpop.permute.xlu1 %989  ;;  %v993_v26 = vpop.permute.xlu0 %992 }
 0x2af   : > { %vm1006_vm2 = vcmp.eq.s32.totalorder %v990_v9, 1  ;;  %vm1007_vm8 = vcmp.eq.s32.totalorder %v993_v26, 1 }
 0x2b2   : > { %v996_v47 = vpop.permute.xlu1 %995  ;;  %v999_v51 = vpop.permute.xlu0 %998 }
 0x2b3   : > { %vm1008_vm6 = vcmp.eq.s32.totalorder %v996_v47, 1  ;;  %vm1009_vm15 = vcmp.eq.s32.totalorder %v999_v51, 1 }
 0x2b6   : > { %v1002_v38 = vpop.permute.xlu1 %1001 }
 0x2b7   : > { %vm1010_vm14 = vcmp.eq.s32.totalorder %v1002_v38, 1 }
 0x359   : > { %v1730_v19 = vpop.f32.mrf.mxu1 }
 0x35a   : > { %v1014_v20 = vsel %vm1006_vm2, %v1730_v19, %v966_v18 }
 0x35b   : > { %1023 = vst.msk [vmem:[#allocation3 + $0x18] sm:$0xff] %vm1019_vm1, %v1014_v20  ;;  %v901_v28 = vpop.f32.mrf.mxu1 }
 0x35c   : > { %v1013_v34 = vsel %vm1005_vm4, %v901_v28, %v965_v30 }
 0x35d   : > { %1022 = vst.msk [vmem:[#allocation3 + $0x10] sm:$0xff] %vm1019_vm1, %v1013_v34 }
 0x361   : > { %v1733_v35 = vpop.f32.mrf.mxu1 }
 0x362   : > { %v1016_v31 = vsel %vm1008_vm6, %v1733_v35, %v968_v25 }
 0x363   : > { %1025 = vst.msk [vmem:[#allocation3 + $0x28] sm:$0xff] %vm1019_vm1, %v1016_v31  ;;  %v911_v32 = vpop.f32.mrf.mxu1 }
 0x364   : > { %v1015_v37 = vsel %vm1007_vm8, %v911_v32, %v967_v36 }
 0x365   : > { %1024 = vst.msk [vmem:[#allocation3 + $0x20] sm:$0xff] %vm1019_vm1, %v1015_v37 }
 0x368   : > { %v1727_v48 = vpop.f32.mrf.mxu0  ;;  %v1736_v49 = vpop.f32.mrf.mxu1  ;;  %1031 = sbr.rel (%p1585_p9) target bundleno = 1360 (0x550), region = 64 }
 0x369   : > { %v1012_v61 = vsel %vm1004_vm10, %v1727_v48, %v964_v55  ;;  %v1018_v0 = vsel %vm1010_vm14, %v1736_v49, %v970_v50 }
 0x36a   : > { %1021 = vst.msk [vmem:[#allocation3 + $0x8] sm:$0xff] %vm1019_vm1, %v1012_v61  ;;  %1027 = vst.msk [vmem:[#allocation3 + $0x38] sm:$0xff] %vm1019_vm1, %v1018_v0  ;;  %v891_v3 = vpop.f32.mrf.mxu0  ;;  %v921_v5 = vpop.f32.mrf.mxu1 }
 0x36b   : > { %v1011_v6 = vsel %vm1003_vm13, %v891_v3, %v963_v56  ;;  %v1017_v39 = vsel %vm1009_vm15, %v921_v5, %v969_v63 }
 0x36c   : > { %1020 = vst.msk [vmem:[#allocation3] sm:$0xff] %vm1019_vm1, %v1011_v6  ;;  %1026 = vst.msk [vmem:[#allocation3 + $0x30] sm:$0xff] %vm1019_vm1, %v1017_v39 }
 0x36d   : > { %v1043_v13 = vld [vmem:[%s2494_s5 + $0x18] sm:$0xff]  ;;  %v1042_v14 = vld [vmem:[%s2494_s5 + $0x10] sm:$0xff]  ;;  %v1041_v41 = vld [vmem:[%s2494_s5 + $0x8] sm:$0xff] }
 0x36e   : > { %1737 = vmatprep.subr.mxu0 %v1043_v13  ;;  %v1040_v7 = vld [vmem:[%s2494_s5] sm:$0xff]  ;;  %v1034_v24 = vld [vmem:[#allocation3 + $0x10] sm:$0xff]  ;;  %v1035_v42 = vld [vmem:[#allocation3 + $0x18] sm:$0xff] }
 0x36f   : > { %1738 = vmatpush3.msra.mxu0 %v1043_v13  ;;  %v1036_v43 = vld [vmem:[#allocation3 + $0x20] sm:$0xff]  ;;  %v1037_v44 = vld [vmem:[#allocation3 + $0x28] sm:$0xff]  ;;  %v1239_v53 = vld [vmem:[%s2496_s7 + $0x18] sm:$0xff] }
 0x370   : > { %1739 = vmatprep.subr.mxu0 %v1042_v14  ;;  %1757 = vmatprep.subr.mxu1 %v1239_v53  ;;  %v1238_v54 = vld [vmem:[%s2496_s7 + $0x10] sm:$0xff]  ;;  %v1237_v58 = vld [vmem:[%s2496_s7 + $0x8] sm:$0xff]  ;;  %v1236_v60 = vld [vmem:[%s2496_s7] sm:$0xff] }
 0x371   : > { %1740 = vmatpush3.msra.mxu0 %v1042_v14  ;;  %v1033_v21 = vld [vmem:[#allocation3 + $0x8] sm:$0xff]  ;;  %v1039_v46 = vld [vmem:[#allocation3 + $0x38] sm:$0xff]  ;;  %1758 = vmatpush3.msra.mxu1 %v1239_v53  ;;  %v1586_v2 = vld [vmem:[%s2495_s6] ss:$0 sm:$0xff] }
 0x372   : > { %1741 = vmatprep.subr.mxu0 %v1041_v41  ;;  %1759 = vmatprep.subr.mxu1 %v1238_v54 }
 0x373   : > { %v1032_v40 = vld [vmem:[#allocation3] sm:$0xff]  ;;  %1742 = vmatpush3.msra.mxu0 %v1041_v41  ;;  %v1038_v45 = vld [vmem:[#allocation3 + $0x30] sm:$0xff]  ;;  %1760 = vmatpush3.msra.mxu1 %v1238_v54 }
 0x374   : > { %1745 = vmatprep.mubr.msk.f32.mxu0 %vm1019_vm1, %v1032_v40  ;;  %1743 = vmatprep.subr.mxu0 %v1040_v7 }
 0x375   : > { %1744 = vmatpush3.msra.mxu0 %v1040_v7  ;;  %1761 = vmatprep.subr.mxu1 %v1237_v58 }
 0x376   : > { %1746 = vmatmul.mubr.msk.f32.vlgmr.msra.gmra.mxu0 %vm1019_vm1, %v1033_v21  ;;  %1762 = vmatpush3.msra.mxu1 %v1237_v58 }
 0x377   : > { %1748 = vmatprep.mubr.msk.f32.mxu0 %vm1019_vm1, %v1034_v24  ;;  %1763 = vmatprep.subr.mxu1 %v1236_v60 }
 0x378   : > { %1764 = vmatpush3.msra.mxu1 %v1236_v60 }
 0x37a   : > { %1749 = vmatmul.mubr.msk.f32.gmra.mxu0 %vm1019_vm1, %v1035_v42 }
 0x37b   : > { %1751 = vmatprep.mubr.msk.f32.mxu0 %vm1019_vm1, %v1036_v43 }
 0x37e   : > { %1752 = vmatmul.mubr.msk.f32.gmra.mxu0 %vm1019_vm1, %v1037_v44  ;;  %v1603_v44 = vld [vmem:[#allocation4] ss:$0 sm:$0xff] }
 0x37f   : > { %1754 = vmatprep.mubr.msk.f32.mxu0 %vm1019_vm1, %v1038_v45 }
 0x382   : > { %1755 = vmatmul.mubr.msk.f32.gmra.mxu0 %vm1019_vm1, %v1039_v46 }
 0x436   : > { %v1747_v4 = vpop.f32.mrf.mxu0 }
 0x437   : > { %v1147_v11 = vadd.f32 %v1747_v4, %v1586_v2 }
 0x438   : > { %v1141_v52 = vpop.f32.mrf.mxu0 }
 0x439   : > { %v1596_v57 = vmul.f32 -1.442695, %v1147_v11  ;;  %v1142_v12 = vadd.f32 %v1586_v2, %v1141_v52 }
 0x43a   : > { %v1750_v59 = vpop.f32.mrf.mxu0 }
 0x43b   : > { %1855 = vpow2.f32 %v1596_v57  ;;  %v1595_v15 = vmul.f32 -1.442695, %v1142_v12  ;;  %v1157_v1 = vadd.f32 %v1750_v59, %v1586_v2 }
 0x43c   : > { %v1151_v16 = vpop.f32.mrf.mxu0 }
 0x43d   : > { %1857 = vpow2.f32 %v1595_v15  ;;  %v1598_v62 = vmul.f32 -1.442695, %v1157_v1  ;;  %v1152_v17 = vadd.f32 %v1586_v2, %v1151_v16 }
 0x43e   : > { %v1753_v10 = vpop.f32.mrf.mxu0 }
 0x43f   : > { %1859 = vpow2.f32 %v1598_v62  ;;  %v1597_v22 = vmul.f32 -1.442695, %v1152_v17  ;;  %v1167_v8 = vadd.f32 %v1753_v10, %v1586_v2 }
 0x440   : > { %v1161_v23 = vpop.f32.mrf.mxu0 }
 0x441   : > { %1861 = vpow2.f32 %v1597_v22  ;;  %v1600_v27 = vmul.f32 -1.442695, %v1167_v8  ;;  %v1162_v29 = vadd.f32 %v1586_v2, %v1161_v23 }
 0x442   : > { %v1756_v9 = vpop.f32.mrf.mxu0 }
 0x443   : > { %1863 = vpow2.f32 %v1600_v27  ;;  %v1599_v18 = vmul.f32 -1.442695, %v1162_v29  ;;  %v1177_v19 = vadd.f32 %v1756_v9, %v1586_v2 }
 0x444   : > { %v1171_v30 = vpop.f32.mrf.mxu0 }
 0x445   : > { %1865 = vpow2.f32 %v1599_v18  ;;  %v1602_v33 = vmul.f32 -1.442695, %v1177_v19  ;;  %v1172_v20 = vadd.f32 %v1586_v2, %v1171_v30 }
 0x447   : > { %1867 = vpow2.f32 %v1602_v33  ;;  %v1601_v28 = vmul.f32 -1.442695, %v1172_v20 }
 0x448   : > { %v1856_v34 = vpop.eup %1855 }
 0x449   : > { %v1205_v47 = vadd.f32 1.0, %v1856_v34  ;;  %1869 = vpow2.f32 %v1601_v28 }
 0x44a   : > { %v1858_v25 = vpop.eup %1857 }
 0x44b   : > { %v1204_v26 = vadd.f32 1.0, %v1858_v25  ;;  %1871 = vrcp.f32 %v1205_v47 }
 0x44c   : > { %v1860_v35 = vpop.eup %1859 }
 0x44d   : > { %1873 = vrcp.f32 %v1204_v26  ;;  %v1207_v36 = vadd.f32 1.0, %v1860_v35 }
 0x44e   : > { %v1862_v31 = vpop.eup %1861 }
 0x44f   : > { %v1206_v32 = vadd.f32 1.0, %v1862_v31  ;;  %1875 = vrcp.f32 %v1207_v36 }
 0x450   : > { %v1864_v37 = vpop.eup %1863 }
 0x451   : > { %1877 = vrcp.f32 %v1206_v32  ;;  %v1209_v38 = vadd.f32 1.0, %v1864_v37 }
 0x452   : > { %v1866_v55 = vpop.eup %1865 }
 0x453   : > { %v1208_v50 = vadd.f32 1.0, %v1866_v55  ;;  %1879 = vrcp.f32 %v1209_v38 }
 0x454   : > { %v1868_v51 = vpop.eup %1867 }
 0x455   : > { %1881 = vrcp.f32 %v1208_v50  ;;  %v1211_v48 = vadd.f32 1.0, %v1868_v51 }
 0x456   : > { %v1870_v49 = vpop.eup %1869 }
 0x457   : > { %v1210_v56 = vadd.f32 1.0, %v1870_v49  ;;  %1883 = vrcp.f32 %v1211_v48 }
 0x458   : > { %v1872_v63 = vpop.eup %1871 }
 0x459   : > { %1885 = vrcp.f32 %v1210_v56  ;;  %v1229_v3 = vmul.f32 %v1872_v63, %v1147_v11 }
 0x45a   : > { %v1874_v61 = vpop.eup %1873 }
 0x45b   : > { %v1228_v0 = vmul.f32 %v1874_v61, %v1142_v12 }
 0x45c   : > { %v1876_v5 = vpop.eup %1875 }
 0x45d   : > { %1765 = vmatprep.mubr.msk.f32.mxu1 %vm1019_vm1, %v1228_v0  ;;  %v1231_v13 = vmul.f32 %v1876_v5, %v1157_v1 }
 0x45e   : > { %v1878_v6 = vpop.eup %1877  ;;  %1766 = vmatmul.mubr.msk.f32.vlgmr.msra.gmra.mxu1 %vm1019_vm1, %v1229_v3 }
 0x45f   : > { %v1230_v39 = vmul.f32 %v1878_v6, %v1152_v17 }
 0x460   : > { %v1880_v14 = vpop.eup %1879 }
 0x461   : > { %1768 = vmatprep.mubr.msk.f32.mxu1 %vm1019_vm1, %v1230_v39  ;;  %v1233_v7 = vmul.f32 %v1880_v14, %v1167_v8 }
 0x462   : > { %v1882_v40 = vpop.eup %1881  ;;  %1769 = vmatmul.mubr.msk.f32.gmra.mxu1 %vm1019_vm1, %v1231_v13 }
 0x463   : > { %v1232_v41 = vmul.f32 %v1882_v40, %v1162_v29 }
 0x464   : > { %v1884_v21 = vpop.eup %1883 }
 0x465   : > { %1771 = vmatprep.mubr.msk.f32.mxu1 %vm1019_vm1, %v1232_v41  ;;  %v1235_v43 = vmul.f32 %v1884_v21, %v1177_v19 }
 0x466   : > { %v1886_v24 = vpop.eup %1885  ;;  %1772 = vmatmul.mubr.msk.f32.gmra.mxu1 %vm1019_vm1, %v1233_v7 }
 0x467   : > { %v1234_v42 = vmul.f32 %v1886_v24, %v1172_v20 }
 0x469   : > { %1774 = vmatprep.mubr.msk.f32.mxu1 %vm1019_vm1, %v1234_v42 }
 0x46a   : > { %1775 = vmatmul.mubr.msk.f32.gmra.mxu1 %vm1019_vm1, %v1235_v43 }
 0x51e   : > { %v1767_v45 = vpop.f32.mrf.mxu1 }
 0x51f   : > { %v1343_v46 = vadd.f32 %v1767_v45, %v1603_v44 }
 0x520   : > { %v1337_v53 = vpop.f32.mrf.mxu1 }
 0x521   : > { %v1613_v54 = vmul.f32 -1.442695, %v1343_v46  ;;  %v1338_v58 = vadd.f32 %v1603_v44, %v1337_v53 }
 0x522   : > { %v1770_v60 = vpop.f32.mrf.mxu1 }
 0x523   : > { %1887 = vpow2.f32 %v1613_v54  ;;  %v1612_v2 = vmul.f32 -1.442695, %v1338_v58  ;;  %v1353_v4 = vadd.f32 %v1770_v60, %v1603_v44 }
 0x524   : > { %v1347_v11 = vpop.f32.mrf.mxu1 }
 0x525   : > { %1889 = vpow2.f32 %v1612_v2  ;;  %v1615_v52 = vmul.f32 -1.442695, %v1353_v4  ;;  %v1348_v57 = vadd.f32 %v1603_v44, %v1347_v11 }
 0x526   : > { %v1773_v12 = vpop.f32.mrf.mxu1 }
 0x527   : > { %1891 = vpow2.f32 %v1615_v52  ;;  %v1614_v59 = vmul.f32 -1.442695, %v1348_v57  ;;  %v1363_v15 = vadd.f32 %v1773_v12, %v1603_v44 }
 0x528   : > { %v1357_v1 = vpop.f32.mrf.mxu1 }
 0x529   : > { %1893 = vpow2.f32 %v1614_v59  ;;  %v1617_v16 = vmul.f32 -1.442695, %v1363_v15  ;;  %v1358_v62 = vadd.f32 %v1603_v44, %v1357_v1 }
 0x52a   : > { %v1776_v17 = vpop.f32.mrf.mxu1 }
 0x52b   : > { %1895 = vpow2.f32 %v1617_v16  ;;  %v1616_v10 = vmul.f32 -1.442695, %v1358_v62  ;;  %v1373_v22 = vadd.f32 %v1776_v17, %v1603_v44 }
 0x52c   : > { %v1367_v8 = vpop.f32.mrf.mxu1 }
 0x52d   : > { %1897 = vpow2.f32 %v1616_v10  ;;  %v1619_v23 = vmul.f32 -1.442695, %v1373_v22  ;;  %v1368_v27 = vadd.f32 %v1603_v44, %v1367_v8 }
 0x52f   : > { %1899 = vpow2.f32 %v1619_v23  ;;  %v1618_v29 = vmul.f32 -1.442695, %v1368_v27 }
 0x530   : > { %v1888_v9 = vpop.eup %1887 }
 0x531   : > { %v1401_v18 = vadd.f32 1.0, %v1888_v9  ;;  %1901 = vpow2.f32 %v1618_v29 }
 0x532   : > { %v1890_v19 = vpop.eup %1889 }
 0x533   : > { %1903 = vrcp.f32 %v1401_v18  ;;  %v1400_v30 = vadd.f32 1.0, %v1890_v19 }
 0x534   : > { %v1892_v33 = vpop.eup %1891 }
 0x535   : > { %1905 = vrcp.f32 %v1400_v30  ;;  %v1403_v20 = vadd.f32 1.0, %v1892_v33 }
 0x536   : > { %v1894_v28 = vpop.eup %1893 }
 0x537   : > { %1907 = vrcp.f32 %v1403_v20  ;;  %v1402_v34 = vadd.f32 1.0, %v1894_v28 }
 0x538   : > { %v1896_v47 = vpop.eup %1895 }
 0x539   : > { %1909 = vrcp.f32 %v1402_v34  ;;  %v1405_v25 = vadd.f32 1.0, %v1896_v47 }
 0x53a   : > { %v1898_v26 = vpop.eup %1897 }
 0x53b   : > { %1911 = vrcp.f32 %v1405_v25  ;;  %v1404_v35 = vadd.f32 1.0, %v1898_v26 }
 0x53c   : > { %v1900_v36 = vpop.eup %1899 }
 0x53d   : > { %1913 = vrcp.f32 %v1404_v35  ;;  %v1407_v31 = vadd.f32 1.0, %v1900_v36 }
 0x53e   : > { %v1902_v32 = vpop.eup %1901 }
 0x53f   : > { %1915 = vrcp.f32 %v1407_v31  ;;  %v1406_v37 = vadd.f32 1.0, %v1902_v32 }
 0x540   : > { %v1904_v38 = vpop.eup %1903 }
 0x541   : > { %1425 = vst.msk [vmem:[%s2076_s17 + $0x8] sm:$0xff] %vm954_vm11, %v1904_v38  ;;  %1917 = vrcp.f32 %v1406_v37 }
 0x542   : > { %v1906_v55 = vpop.eup %1905 }
 0x543   : > { %1424 = vst.msk [vmem:[%s2076_s17] sm:$0xff] %vm954_vm11, %v1906_v55 }
 0x544   : > { %v1908_v50 = vpop.eup %1907 }
 0x545   : > { %1427 = vst.msk [vmem:[%s2076_s17 + $0x18] sm:$0xff] %vm954_vm11, %v1908_v50 }
 0x546   : > { %v1910_v51 = vpop.eup %1909 }
 0x547   : > { %1426 = vst.msk [vmem:[%s2076_s17 + $0x10] sm:$0xff] %vm954_vm11, %v1910_v51 }
 0x548   : > { %v1912_v48 = vpop.eup %1911 }
 0x549   : > { %1429 = vst.msk [vmem:[%s2076_s17 + $0x28] sm:$0xff] %vm954_vm11, %v1912_v48 }
 0x54a   : > { %v1914_v49 = vpop.eup %1913 }
 0x54b   : > { %1428 = vst.msk [vmem:[%s2076_s17 + $0x20] sm:$0xff] %vm954_vm11, %v1914_v49 }
 0x54c   : > { %v1916_v56 = vpop.eup %1915 }
 0x54d   : > { %1431 = vst.msk [vmem:[%s2076_s17 + $0x38] sm:$0xff] %vm954_vm11, %v1916_v56 }
 0x54e   : > { %v1918_v63 = vpop.eup %1917 }
 0x54f   : > { %1430 = vst.msk [vmem:[%s2076_s17 + $0x30] sm:$0xff] %vm954_vm11, %v1918_v63 }
 0x550 PF: > { %s21_s15 = sadd.s32 1, %s1957_s15   ;;  %s2501_s16 = sld [smem:[#allocation5_spill]] }
 0x551   : > { %p18_p10 = scmp.ge.s32.totalorder %s21_s15, 11   ;;  %s2502_s19 = sld [smem:[#allocation6_spill]] }
 0x552   : > { %s2503_s11 = smov %s1949_s13  ;;  %s2504_s12 = smov %s1953_s14 }
 0x553   :  { %20 = sbr.rel (!%p18_p10) target bundleno = 3 (0x3), region = 106 }
 0x556   : > { %s2505_s13 = smov %s2501_s16 }
 0x557   : > { %s2506_s14 = smov %s2502_s19 }

</bundles_post_ra>
